<compile_context>
chip_gen: v6e
topology: v6e:2x2x1
jax: 0.10.0
libtpu: 0.0.40
codegen_flags: <defaults>
</compile_context>

<pallas_src>
import jax
import jax.numpy as jnp
from jax.experimental import pallas as pl
from jax.experimental.pallas import tpu as pltpu


def _head_kernel(x_ref, w_ref, o_ref):
    # x_ref : (B, T, C)   full input block
    # w_ref : (C, 3H)     fused [wq | wk | wv] weights
    # o_ref : (B, T, H)
    B, T, C = x_ref.shape
    H = o_ref.shape[-1]

    # ---- Fused QKV projection: (B*T, C) @ (C, 3H), bf16 in, f32 accumulate.
    x2d = x_ref[...].reshape(B * T, C).astype(jnp.bfloat16)
    w = w_ref[...].astype(jnp.bfloat16)
    qkv = jnp.dot(x2d, w, preferred_element_type=jnp.float32)      # (B*T, 3H) f32
    qkv = qkv.reshape(B, T, 3 * H)

    # Reference scales by C ** -0.5 (C = n_embd, NOT head_size) -- keep that,
    # but fold it into q (T*H elements) instead of the (T,T) score matrix.
    scale = jnp.float32(C) ** jnp.float32(-0.5)
    q = (qkv[:, :, 0 * H:1 * H] * scale).astype(jnp.bfloat16)
    k = qkv[:, :, 1 * H:2 * H].astype(jnp.bfloat16)
    v = qkv[:, :, 2 * H:3 * H].astype(jnp.bfloat16)

    # ---- Scores: contract the last axes directly (no explicit k transpose).
    wei = jnp.einsum('bqd,bkd->bqk', q, k,
                     preferred_element_type=jnp.float32)           # (B, T, T) f32

    # ---- Causal mask (tril): future positions -> -inf.
    row = jax.lax.broadcasted_iota(jnp.int32, (B, T, T), 1)
    col = jax.lax.broadcasted_iota(jnp.int32, (B, T, T), 2)
    wei = jnp.where(col <= row, wei, -jnp.inf)

    # ---- Numerically stable softmax along the last axis.
    wei = wei - jnp.max(wei, axis=-1, keepdims=True)
    ew = jnp.exp(wei)
    inv_denom = pl.reciprocal(jnp.sum(ew, axis=-1, keepdims=True), approx=True)
    p = (ew * inv_denom).astype(jnp.bfloat16)

    # Dropout in the reference discards its result -- intentionally omitted.

    # ---- Weighted sum of values: (B,T,T) @ (B,T,H) -> (B,T,H).
    out = jnp.einsum('bqk,bkd->bqd', p, v,
                     preferred_element_type=jnp.float32)
    o_ref[...] = out.astype(o_ref.dtype)


def head_forward(x, wk, wq, wv):
    """x: (B, T, C); wk/wq/wv: (C, H) [= PyTorch linear weight transposed]."""
    B, T, C = x.shape
    H = wk.shape[1]
    # Fuse the three projection weights into a single (C, 3H) operand:
    # columns [0:H) -> q, [H:2H) -> k, [2H:3H) -> v.
    w_qkv = jnp.concatenate([wq, wk, wv], axis=1)
    return pl.pallas_call(
        _head_kernel,
        out_shape=jax.ShapeDtypeStruct((B, T, H), jnp.float32),
        grid_spec=pltpu.PrefetchScalarGridSpec(
            num_scalar_prefetch=0,
            grid=(1,),  # whole (small) problem in one step; batch folded into M
            in_specs=[
                pl.BlockSpec((B, T, C), lambda i: (0, 0, 0)),
                pl.BlockSpec((C, 3 * H), lambda i: (0, 0)),
            ],
            out_specs=pl.BlockSpec((B, T, H), lambda i: (0, 0, 0)),
        ),
        compiler_params=pltpu.CompilerParams(
            dimension_semantics=("arbitrary",)),
    )(x, w_qkv)


def head_reference(x, wk, wq, wv):
    """Pure-JAX f32 reference mirroring the PyTorch forward."""
    B, T, C = x.shape
    k = x @ wk
    q = x @ wq
    v = x @ wv
    wei = (q @ jnp.swapaxes(k, -2, -1)) * (C ** -0.5)
    row = jnp.arange(T)[:, None]
    col = jnp.arange(T)[None, :]
    wei = jnp.where(col <= row, wei, -jnp.inf)
    wei = jax.nn.softmax(wei, axis=-1)
    return wei @ v


if __name__ == "__main__":
    # Module-consistent small shapes: n_embd=384 (from the spec), head_size=64
    # (= n_embd / 6, a typical multi-head split), batch=2, seq=16 (<= block_size=256).
    B, T, C, H = 2, 16, 384, 64

    key = jax.random.PRNGKey(0)
    kx, kk, kq, kv = jax.random.split(key, 4)
    x = jax.random.normal(kx, (B, T, C), dtype=jnp.float32)
    # Deterministic "linear" weights, stored as (C, H) (already transposed).
    wk = jax.random.normal(kk, (C, H), dtype=jnp.float32) * (C ** -0.5)
    wq = jax.random.normal(kq, (C, H), dtype=jnp.float32) * (C ** -0.5)
    wv = jax.random.normal(kv, (C, H), dtype=jnp.float32) * (C ** -0.5)

    out = jax.block_until_ready(head_forward(x, wk, wq, wv))
    ref = head_reference(x, wk, wq, wv)

    assert out.shape == (B, T, H)
    # bf16 MXU inputs (f32 accumulation) + approx reciprocal => loosened tolerance.
    assert jnp.allclose(out, ref, atol=5e-2, rtol=5e-2), "mismatch vs reference"

    print("KERNEL_OK")
</pallas_src>

<mosaic_0001>
module attributes {stable_mosaic.version = 11 : i64} {
  func.func @_head_kernel(%arg0: i32, %arg1: memref<2x16x384xf32, #tpu.memory_space<vmem>>, %arg2: memref<384x192xf32, #tpu.memory_space<vmem>>, %arg3: memref<2x16x64xf32, #tpu.memory_space<vmem>>) attributes {dimension_semantics = [#tpu.dimension_semantics<arbitrary>], iteration_bounds = array<i64: 1>, scalar_prefetch = 0 : i64, scratch_operands = 0 : i64, tpu.core_type = #tpu.core_type<tc>, window_params = [{pipeline_mode = #tpu.pipeline_mode<synchronous>, transform_indices = @transform_0, window_bounds = array<i64: 2, 16, 384>}, {pipeline_mode = #tpu.pipeline_mode<synchronous>, transform_indices = @transform_1, window_bounds = array<i64: 384, 192>}, {pipeline_mode = #tpu.pipeline_mode<synchronous>, transform_indices = @transform_2, window_bounds = array<i64: 2, 16, 64>}]} {
    %c0 = arith.constant 0 : index
    %c0_0 = arith.constant 0 : index
    %c0_1 = arith.constant 0 : index
    %0 = vector.load %arg1[%c0, %c0_0, %c0_1] : memref<2x16x384xf32, #tpu.memory_space<vmem>>, vector<2x16x384xf32>
    %1 = vector.shape_cast %0 : vector<2x16x384xf32> to vector<32x384xf32>
    %2 = arith.truncf %1 : vector<32x384xf32> to vector<32x384xbf16>
    %c0_2 = arith.constant 0 : index
    %c0_3 = arith.constant 0 : index
    %3 = vector.load %arg2[%c0_2, %c0_3] : memref<384x192xf32, #tpu.memory_space<vmem>>, vector<384x192xf32>
    %4 = arith.truncf %3 : vector<384x192xf32> to vector<384x192xbf16>
    %cst = arith.constant dense<0.000000e+00> : vector<32x192xf32>
    %5 = tpu.matmul %2, %4, %cst {dimension_numbers = #tpu.dot_dimension_numbers<[1], [0], [0], [1], [0, 0, 1, 1], [], []>} : vector<32x384xbf16>, vector<384x192xbf16>, vector<32x192xf32> -> vector<32x192xf32>
    %6 = vector.shape_cast %5 : vector<32x192xf32> to vector<2x16x192xf32>
    %cst_4 = arith.constant 3.840000e+02 : f32
    %cst_5 = arith.constant -5.000000e-01 : f32
    %7 = math.powf %cst_4, %cst_5 : f32
    %8 = vector.extract_strided_slice %6 {offsets = [0, 0, 0], sizes = [2, 16, 64], strides = [1, 1, 1]} : vector<2x16x192xf32> to vector<2x16x64xf32>
    %9 = vector.broadcast %7 : f32 to vector<2x16x64xf32>
    %10 = arith.mulf %8, %9 : vector<2x16x64xf32>
    %11 = arith.truncf %10 : vector<2x16x64xf32> to vector<2x16x64xbf16>
    %12 = vector.extract_strided_slice %6 {offsets = [0, 0, 64], sizes = [2, 16, 64], strides = [1, 1, 1]} : vector<2x16x192xf32> to vector<2x16x64xf32>
    %13 = arith.truncf %12 : vector<2x16x64xf32> to vector<2x16x64xbf16>
    %14 = vector.extract_strided_slice %6 {offsets = [0, 0, 128], sizes = [2, 16, 64], strides = [1, 1, 1]} : vector<2x16x192xf32> to vector<2x16x64xf32>
    %15 = arith.truncf %14 : vector<2x16x64xf32> to vector<2x16x64xbf16>
    "tpu.trace_start"() <{level = 10 : i32, message = "bqd,bkd->bqk"}> : () -> ()
    %cst_6 = arith.constant dense<0.000000e+00> : vector<2x16x16xf32>
    %16 = tpu.matmul %11, %13, %cst_6 {dimension_numbers = #tpu.dot_dimension_numbers<[2], [2], [1], [1], [0, 0, 0, 1, 1, 1], [0], [0]>} : vector<2x16x64xbf16>, vector<2x16x64xbf16>, vector<2x16x16xf32> -> vector<2x16x16xf32>
    "tpu.trace_stop"() : () -> ()
    %17 = tpu.iota {dimensions = array<i32: 1>} : vector<2x16x16xi32>
    %18 = tpu.iota {dimensions = array<i32: 2>} : vector<2x16x16xi32>
    %19 = arith.cmpi sle, %18, %17 : vector<2x16x16xi32>
    %cst_7 = arith.constant 0xFF800000 : f32
    %20 = vector.broadcast %cst_7 : f32 to vector<2x16x16xf32>
    %21 = arith.select %19, %16, %20 : vector<2x16x16xi1>, vector<2x16x16xf32>
    %cst_8 = arith.constant dense<0xFF800000> : vector<2x16xf32>
    %22 = vector.multi_reduction <maximumf>, %21, %cst_8 [2] : vector<2x16x16xf32> to vector<2x16xf32>
    %23 = vector.shape_cast %22 : vector<2x16xf32> to vector<2x16x1xf32>
    %24 = vector.broadcast %23 : vector<2x16x1xf32> to vector<2x16x16xf32>
    %25 = arith.subf %21, %24 : vector<2x16x16xf32>
    %26 = math.exp %25 : vector<2x16x16xf32>
    %cst_9 = arith.constant dense<0.000000e+00> : vector<2x16xf32>
    %27 = vector.multi_reduction <add>, %26, %cst_9 [2] : vector<2x16x16xf32> to vector<2x16xf32>
    %28 = vector.shape_cast %27 : vector<2x16xf32> to vector<2x16x1xf32>
    %29 = tpu.reciprocal %28 {approx = true} : vector<2x16x1xf32> -> vector<2x16x1xf32>
    %30 = vector.broadcast %29 : vector<2x16x1xf32> to vector<2x16x16xf32>
    %31 = arith.mulf %26, %30 : vector<2x16x16xf32>
    %32 = arith.truncf %31 : vector<2x16x16xf32> to vector<2x16x16xbf16>
    "tpu.trace_start"() <{level = 10 : i32, message = "bqk,bkd->bqd"}> : () -> ()
    %cst_10 = arith.constant dense<0.000000e+00> : vector<2x16x64xf32>
    %33 = tpu.matmul %32, %15, %cst_10 {dimension_numbers = #tpu.dot_dimension_numbers<[2], [1], [1], [2], [0, 0, 0, 1, 1, 2], [0], [0]>} : vector<2x16x16xbf16>, vector<2x16x64xbf16>, vector<2x16x64xf32> -> vector<2x16x64xf32>
    "tpu.trace_stop"() : () -> ()
    %c0_11 = arith.constant 0 : index
    %c0_12 = arith.constant 0 : index
    %c0_13 = arith.constant 0 : index
    %34 = vector.load %arg3[%c0_11, %c0_12, %c0_13] : memref<2x16x64xf32, #tpu.memory_space<vmem>>, vector<2x16x64xf32>
    tpu.vector_store %arg3[%c0_11, %c0_12, %c0_13], %33 {strides = array<i32>} : memref<2x16x64xf32, #tpu.memory_space<vmem>>, vector<2x16x64xf32>,
    return
  }
  func.func @transform_0(%arg0: i32) -> (i32, i32, i32) {
    %c0_i32 = arith.constant 0 : i32
    %c0_i32_0 = arith.constant 0 : i32
    %c0_i32_1 = arith.constant 0 : i32
    %c0_i32_2 = arith.constant 0 : i32
    return %c0_i32, %c0_i32_0, %c0_i32_1 : i32, i32, i32
  }
  func.func @transform_1(%arg0: i32) -> (i32, i32) {
    %c0_i32 = arith.constant 0 : i32
    %c0_i32_0 = arith.constant 0 : i32
    %c0_i32_1 = arith.constant 0 : i32
    return %c0_i32, %c0_i32_0 : i32, i32
  }
  func.func @transform_2(%arg0: i32) -> (i32, i32, i32) {
    %c0_i32 = arith.constant 0 : i32
    %c0_i32_0 = arith.constant 0 : i32
    %c0_i32_1 = arith.constant 0 : i32
    %c0_i32_2 = arith.constant 0 : i32
    return %c0_i32, %c0_i32_0, %c0_i32_1 : i32, i32, i32
  }
}

</mosaic_0001>

<bundles_post_ra>
// kernel: tpu_custom_call.1
= control target key start
LH: loop header
LB: loop body
LE: loop exit
PB: predicated region body
PF: predicated region fallthrough
CT: control target
= control target key end

     0   :  { %v639_v7 = vmov 0   ;;  %s1026_s0 = inlined_call_operand.vmem [shape: f32[2,16,384], index: 0, kind: input, shape index: {}]   ;;  %s1027_s1 = inlined_call_operand.vmem [shape: f32[384,192], index: 1, kind: input, shape index: {}]   ;;  %s1028_s2 = inlined_call_operand.hbm [shape: f32[2,16,64], index: 2, kind: output, shape index: {}]  }
   0x1   :  { %v60_v0 = vld [vmem:[%s1027_s1 + $0xe8] sm:$0xff]  ;;  %v62_v1 = vld [vmem:[%s1027_s1 + $0xf8] sm:$0xff]  ;;  %v59_v2 = vld [vmem:[%s1027_s1 + $0xe0] sm:$0xff]  ;;  %260 = vmatprep.mubr.bf16.mxu1 %v639_v7 }
   0x2   :  { %v142_v3 = vpack.c.bf16 %v62_v1, %v60_v0  ;;  %v61_v4 = vld [vmem:[%s1027_s1 + $0xf0] sm:$0xff]  ;;  %v56_v5 = vld [vmem:[%s1027_s1 + $0xc8] sm:$0xff]  ;;  %v58_v6 = vld [vmem:[%s1027_s1 + $0xd8] sm:$0xff] }
   0x3   :  { %v141_v8 = vpack.c.bf16 %v61_v4, %v59_v2  ;;  %v140_v9 = vpack.c.bf16 %v58_v6, %v56_v5  ;;  %v55_v10 = vld [vmem:[%s1027_s1 + $0xc0] sm:$0xff]  ;;  %v57_v11 = vld [vmem:[%s1027_s1 + $0xd0] sm:$0xff]  ;;  %v52_v12 = vld [vmem:[%s1027_s1 + $0xa8] sm:$0xff] }
   0x4   :  { %175 = vmatprep.subr.bf16.mxu0 %v142_v3  ;;  %v54_v13 = vld [vmem:[%s1027_s1 + $0xb8] sm:$0xff]  ;;  %v139_v14 = vpack.c.bf16 %v57_v11, %v55_v10  ;;  %v51_v16 = vld [vmem:[%s1027_s1 + $0xa0] sm:$0xff]  ;;  %v53_v17 = vld [vmem:[%s1027_s1 + $0xb0] sm:$0xff] }
   0x5   :  { %176 = vmatpush1.bf16.msra.mxu0 %v141_v8  ;;  %v138_v15 = vpack.c.bf16 %v54_v13, %v52_v12  ;;  %v48_v18 = vld [vmem:[%s1027_s1 + $0x88] sm:$0xff]  ;;  %v50_v19 = vld [vmem:[%s1027_s1 + $0x98] sm:$0xff]  ;;  %v137_v20 = vpack.c.bf16 %v53_v17, %v51_v16  ;;  %v47_v21 = vld [vmem:[%s1027_s1 + $0x80] sm:$0xff] }
   0x6   :  { %177 = vmatprep.subr.bf16.mxu0 %v140_v9  ;;  %v49_v22 = vld [vmem:[%s1027_s1 + $0x90] sm:$0xff]  ;;  %v136_v23 = vpack.c.bf16 %v50_v19, %v48_v18  ;;  %v44_v24 = vld [vmem:[%s1027_s1 + $0x68] sm:$0xff]  ;;  %v126_v26 = vld [vmem:[%s1027_s1 + $0x2f8] sm:$0xff] }
   0x7   :  { %v124_v25 = vld [vmem:[%s1027_s1 + $0x2e8] sm:$0xff]  ;;  %v46_v27 = vld [vmem:[%s1027_s1 + $0x78] sm:$0xff]  ;;  %v123_v29 = vld [vmem:[%s1027_s1 + $0x2e0] sm:$0xff]  ;;  %v135_v32 = vpack.c.bf16 %v49_v22, %v47_v21 }
   0x8   :  { %v174_v28 = vpack.c.bf16 %v126_v26, %v124_v25  ;;  %v125_v30 = vld [vmem:[%s1027_s1 + $0x2f0] sm:$0xff]  ;;  %v120_v33 = vld [vmem:[%s1027_s1 + $0x2c8] sm:$0xff]  ;;  %v122_v34 = vld [vmem:[%s1027_s1 + $0x2d8] sm:$0xff]  ;;  %v134_v36 = vpack.c.bf16 %v46_v27, %v44_v24 }
   0x9   :  { %178 = vmatpush1.bf16.msra.mxu0 %v139_v14  ;;  %v173_v31 = vpack.c.bf16 %v125_v30, %v123_v29  ;;  %v119_v35 = vld [vmem:[%s1027_s1 + $0x2c0] sm:$0xff]  ;;  %v45_v38 = vld [vmem:[%s1027_s1 + $0x70] sm:$0xff]  ;;  %v172_v39 = vpack.c.bf16 %v122_v34, %v120_v33  ;;  %v40_v41 = vld [vmem:[%s1027_s1 + $0x48] sm:$0xff] }
   0xa   :  { %179 = vmatprep.subr.bf16.mxu0 %v138_v15  ;;  %228 = vmatprep.subr.bf16.mxu1 %v174_v28  ;;  %v43_v37 = vld [vmem:[%s1027_s1 + $0x60] sm:$0xff]  ;;  %v121_v40 = vld [vmem:[%s1027_s1 + $0x2d0] sm:$0xff]  ;;  %v42_v42 = vld [vmem:[%s1027_s1 + $0x58] sm:$0xff] }
   0xb   :  { %229 = vmatpush1.bf16.msra.mxu1 %v173_v31  ;;  %v171_v43 = vpack.c.bf16 %v121_v40, %v119_v35  ;;  %v116_v44 = vld [vmem:[%s1027_s1 + $0x2a8] sm:$0xff]  ;;  %v118_v45 = vld [vmem:[%s1027_s1 + $0x2b8] sm:$0xff]  ;;  %v115_v46 = vld [vmem:[%s1027_s1 + $0x2a0] sm:$0xff]  ;;  %v133_v48 = vpack.c.bf16 %v45_v38, %v43_v37  ;;  %v132_v52 = vpack.c.bf16 %v42_v42, %v40_v41 }
   0xc   :  { %230 = vmatprep.subr.bf16.mxu1 %v172_v39  ;;  %v117_v47 = vld [vmem:[%s1027_s1 + $0x2b0] sm:$0xff]  ;;  %v39_v49 = vld [vmem:[%s1027_s1 + $0x40] sm:$0xff]  ;;  %v170_v51 = vpack.c.bf16 %v118_v45, %v116_v44  ;;  %v36_v53 = vld [vmem:[%s1027_s1 + $0x28] sm:$0xff] }
   0xd   :  { %180 = vmatpush1.bf16.msra.mxu0 %v137_v20  ;;  %v41_v50 = vld [vmem:[%s1027_s1 + $0x50] sm:$0xff]  ;;  %v169_v54 = vpack.c.bf16 %v117_v47, %v115_v46  ;;  %v112_v55 = vld [vmem:[%s1027_s1 + $0x288] sm:$0xff]  ;;  %v114_v56 = vld [vmem:[%s1027_s1 + $0x298] sm:$0xff] }
   0xe   :  { %181 = vmatprep.subr.bf16.mxu0 %v136_v23  ;;  %v38_v57 = vld [vmem:[%s1027_s1 + $0x38] sm:$0xff]  ;;  %v168_v58 = vpack.c.bf16 %v114_v56, %v112_v55  ;;  %v111_v59 = vld [vmem:[%s1027_s1 + $0x280] sm:$0xff]  ;;  %v113_v60 = vld [vmem:[%s1027_s1 + $0x290] sm:$0xff]  ;;  %v131_v61 = vpack.c.bf16 %v41_v50, %v39_v49 }
   0xf   :  { %231 = vmatpush1.bf16.msra.mxu1 %v171_v43  ;;  %v108_v62 = vld [vmem:[%s1027_s1 + $0x268] sm:$0xff]  ;;  %v110_v63 = vld [vmem:[%s1027_s1 + $0x278] sm:$0xff]  ;;  %v130_v0 = vpack.c.bf16 %v38_v57, %v36_v53  ;;  %v35_v1 = vld [vmem:[%s1027_s1 + $0x20] sm:$0xff]  ;;  %v167_v4 = vpack.c.bf16 %v113_v60, %v111_v59 }
  0x10   :  { %232 = vmatprep.subr.bf16.mxu1 %v170_v51  ;;  %v37_v2 = vld [vmem:[%s1027_s1 + $0x30] sm:$0xff]  ;;  %v32_v3 = vld [vmem:[%s1027_s1 + $0x8] sm:$0xff]  ;;  %v34_v5 = vld [vmem:[%s1027_s1 + $0x18] sm:$0xff]  ;;  %v166_v6 = vpack.c.bf16 %v110_v63, %v108_v62 }
  0x11   :  { %182 = vmatpush1.bf16.msra.mxu0 %v135_v32  ;;  %v107_v8 = vld [vmem:[%s1027_s1 + $0x260] sm:$0xff]  ;;  %v109_v9 = vld [vmem:[%s1027_s1 + $0x270] sm:$0xff]  ;;  %v104_v10 = vld [vmem:[%s1027_s1 + $0x248] sm:$0xff]  ;;  %v129_v12 = vpack.c.bf16 %v37_v2, %v35_v1  ;;  %v128_v13 = vpack.c.bf16 %v34_v5, %v32_v3 }
  0x12   :  { %183 = vmatprep.subr.bf16.mxu0 %v134_v36  ;;  %v106_v11 = vld [vmem:[%s1027_s1 + $0x258] sm:$0xff]  ;;  %v31_v14 = vld [vmem:[%s1027_s1] sm:$0xff]  ;;  %v33_v15 = vld [vmem:[%s1027_s1 + $0x10] sm:$0xff]  ;;  %v165_v17 = vpack.c.bf16 %v109_v9, %v107_v8 }
  0x13   :  { %233 = vmatpush1.bf16.msra.mxu1 %v169_v54  ;;  %v92_v16 = vld [vmem:[%s1027_s1 + $0x1e8] sm:$0xff]  ;;  %v94_v18 = vld [vmem:[%s1027_s1 + $0x1f8] sm:$0xff]  ;;  %v164_v19 = vpack.c.bf16 %v106_v11, %v104_v10  ;;  %v103_v20 = vld [vmem:[%s1027_s1 + $0x240] sm:$0xff]  ;;  %v127_v24 = vpack.c.bf16 %v33_v15, %v31_v14 }
  0x14   :  { %234 = vmatprep.subr.bf16.mxu1 %v168_v58  ;;  %v105_v21 = vld [vmem:[%s1027_s1 + $0x250] sm:$0xff]  ;;  %v100_v22 = vld [vmem:[%s1027_s1 + $0x228] sm:$0xff]  ;;  %v102_v23 = vld [vmem:[%s1027_s1 + $0x238] sm:$0xff]  ;;  %v158_v25 = vpack.c.bf16 %v94_v18, %v92_v16 }
  0x15   :  { %184 = vmatpush1.bf16.msra.mxu0 %v133_v48  ;;  %v91_v26 = vld [vmem:[%s1027_s1 + $0x1e0] sm:$0xff]  ;;  %v93_v27 = vld [vmem:[%s1027_s1 + $0x1f0] sm:$0xff]  ;;  %v88_v28 = vld [vmem:[%s1027_s1 + $0x1c8] sm:$0xff]  ;;  %v163_v29 = vpack.c.bf16 %v105_v21, %v103_v20  ;;  %v162_v31 = vpack.c.bf16 %v102_v23, %v100_v22 }
  0x16   :  { %185 = vmatprep.subr.bf16.mxu0 %v132_v52  ;;  %v90_v30 = vld [vmem:[%s1027_s1 + $0x1d8] sm:$0xff]  ;;  %v99_v32 = vld [vmem:[%s1027_s1 + $0x220] sm:$0xff]  ;;  %v101_v33 = vld [vmem:[%s1027_s1 + $0x230] sm:$0xff]  ;;  %v157_v36 = vpack.c.bf16 %v93_v27, %v91_v26 }
  0x17   :  { %235 = vmatpush1.bf16.msra.mxu1 %v167_v4  ;;  %v96_v34 = vld [vmem:[%s1027_s1 + $0x208] sm:$0xff]  ;;  %v98_v35 = vld [vmem:[%s1027_s1 + $0x218] sm:$0xff]  ;;  %v87_v37 = vld [vmem:[%s1027_s1 + $0x1c0] sm:$0xff]  ;;  %v156_v39 = vpack.c.bf16 %v90_v30, %v88_v28  ;;  %v161_v42 = vpack.c.bf16 %v101_v33, %v99_v32 }
  0x18   :  { %236 = vmatprep.subr.bf16.mxu1 %v166_v6  ;;  %v14_v38 = vld [vmem:[%s1026_s0 + $0x8] sm:$0xff]  ;;  %v89_v40 = vld [vmem:[%s1027_s1 + $0x1d0] sm:$0xff]  ;;  %v17_v43 = vld [vmem:[%s1026_s0 + $0x20] sm:$0xff]  ;;  %v160_v45 = vpack.c.bf16 %v98_v35, %v96_v34 }
  0x19   :  { %186 = vmatpush1.bf16.msra.mxu0 %v131_v61  ;;  %v84_v41 = vld [vmem:[%s1027_s1 + $0x1a8] sm:$0xff]  ;;  %v86_v44 = vld [vmem:[%s1027_s1 + $0x1b8] sm:$0xff]  ;;  %v95_v46 = vld [vmem:[%s1027_s1 + $0x200] sm:$0xff]  ;;  %v26_v48 = vpack.c.bf16 %v17_v43, %v14_v38  ;;  %v155_v49 = vpack.c.bf16 %v89_v40, %v87_v37 }
  0x1a   :  { %187 = vmatprep.subr.bf16.mxu0 %v130_v0  ;;  %v97_v47 = vld [vmem:[%s1027_s1 + $0x210] sm:$0xff]  ;;  %v83_v50 = vld [vmem:[%s1027_s1 + $0x1a0] sm:$0xff] }
  0x1b   :  { %237 = vmatpush1.bf16.msra.mxu1 %v165_v17  ;;  %207 = vmatprep.mubr.bf16.mxu0 %v26_v48 }
  0x1c   :  { %238 = vmatprep.subr.bf16.mxu1 %v164_v19 }
  0x1d   :  { %188 = vmatpush1.bf16.msra.mxu0 %v129_v12 }
  0x1e   :  { %189 = vmatprep.subr.bf16.mxu0 %v128_v13 }
  0x1f   :  { %239 = vmatpush1.bf16.msra.mxu1 %v163_v29 }
  0x20   :  { %240 = vmatprep.subr.bf16.mxu1 %v162_v31 }
  0x21   :  { %190 = vmatpush1.bf16.msra.mxu0 %v127_v24 }
  0x22   :  { %191 = vmatprep.subr.bf16.mxu0 %v158_v25 }
  0x25   :  { %192 = vmatpush2.bf16.msra.mxu0 %v157_v36 }
  0x26   :  { %7 = vsyncpa [#allocation3], 0  ;;  %193 = vmatprep.subr.bf16.mxu0 %v156_v39  ;;  %v154_v51 = vpack.c.bf16 %v86_v44, %v84_v41  ;;  %v85_v52 = vld [vmem:[%s1027_s1 + $0x1b0] sm:$0xff]  ;;  %241 = vmatpush1.bf16.msra.mxu1 %v161_v42  ;;  %v159_v53 = vpack.c.bf16 %v97_v47, %v95_v46  ;;  %v18_v55 = vld [vmem:[%s1026_s0 + $0x28] sm:$0xff]  ;;  %v640_v39 = vmov 0.0   ;;  %vm641_vm0 = vmmov 0  }
  0x27   :  { %v15_v54 = vld [vmem:[%s1026_s0 + $0x10] sm:$0xff]  ;;  %v80_v56 = vld [vmem:[%s1027_s1 + $0x188] sm:$0xff]  ;;  %v82_v57 = vld [vmem:[%s1027_s1 + $0x198] sm:$0xff]  ;;  %242 = vmatprep.subr.bf16.mxu1 %v160_v45  ;;  %v153_v58 = vpack.c.bf16 %v85_v52, %v83_v50  ;;  %vm294_vm1 = vcmask 523264   ;;  %vm403_vm3 = vcmask 130048   ;;  %s643_s28 = smov [#allocation2]  }
  0x28   :  { %v27_v59 = vpack.c.bf16 %v18_v55, %v15_v54  ;;  %v152_v60 = vpack.c.bf16 %v82_v57, %v80_v56  ;;  %v79_v61 = vld [vmem:[%s1027_s1 + $0x180] sm:$0xff]  ;;  %v81_v62 = vld [vmem:[%s1027_s1 + $0x190] sm:$0xff]  ;;  %v76_v63 = vld [vmem:[%s1027_s1 + $0x168] sm:$0xff]  ;;  %s547_s29 = sshll.u32 %s643_s28, 4  ;;  %s548_s29 = int_to_ptr.vmem [resolvable:$true] %s547_s29 }
  0x29   :  { %194 = vmatpush2.bf16.msra.mxu0 %v155_v49  ;;  %v78_v0 = vld [vmem:[%s1027_s1 + $0x178] sm:$0xff]  ;;  %v151_v1 = vpack.c.bf16 %v81_v62, %v79_v61  ;;  %v75_v2 = vld [vmem:[%s1027_s1 + $0x160] sm:$0xff]  ;;  %v77_v4 = vld [vmem:[%s1027_s1 + $0x170] sm:$0xff]  ;;  %s617_s30 = scalar_lea.vmem %s548_s29, 512  ;;  %p622_p1 = scmp.lt.s32.totalorder %s548_s29, %s548_s29 }
  0x2a   :  { %195 = vmatprep.subr.bf16.mxu0 %v154_v51  ;;  %243 = vmatpush1.bf16.msra.mxu1 %v159_v53  ;;  %v150_v3 = vpack.c.bf16 %v78_v0, %v76_v63  ;;  %v21_v5 = vld [vmem:[%s1026_s0 + $0x40] sm:$0xff]  ;;  %v24_v6 = vld [vmem:[%s1026_s0 + $0x58] sm:$0xff]  ;;  %v72_v8 = vld [vmem:[%s1027_s1 + $0x148] sm:$0xff]  ;;  %v149_v10 = vpack.c.bf16 %v77_v4, %v75_v2  ;;  %p618_p0 = scmp.ne.s32.totalorder %s548_s29, %s617_s30  ;;  %p623_p2 = scmp.lt.s32.totalorder %s617_s30, %s617_s30 }
  0x2b   :  { %v74_v9 = vld [vmem:[%s1027_s1 + $0x158] sm:$0xff]  ;;  %v30_v11 = vpack.c.bf16 %v24_v6, %v21_v5  ;;  %v71_v12 = vld [vmem:[%s1027_s1 + $0x140] sm:$0xff]  ;;  %v73_v13 = vld [vmem:[%s1027_s1 + $0x150] sm:$0xff]  ;;  %570 = vmatprep.subr.bf16.mxu1 %v640_v39 }
  0x2c   :  { %v68_v14 = vld [vmem:[%s1027_s1 + $0x128] sm:$0xff]  ;;  %v70_v15 = vld [vmem:[%s1027_s1 + $0x138] sm:$0xff]  ;;  %v147_v16 = vpack.c.bf16 %v73_v13, %v71_v12  ;;  %v67_v18 = vld [vmem:[%s1027_s1 + $0x120] sm:$0xff]  ;;  %p624_p3 = por %p623_p2, %p622_p1 }
  0x2d   :  { %196 = vmatpush2.bf16.msra.mxu0 %v153_v58  ;;  %261 = vmatmul.mubr.bf16.vlgmr.msra.gmra.mxu1 %v27_v59  ;;  %v146_v17 = vpack.c.bf16 %v70_v15, %v68_v14  ;;  %v69_v19 = vld [vmem:[%s1027_s1 + $0x130] sm:$0xff]  ;;  %v64_v20 = vld [vmem:[%s1027_s1 + $0x108] sm:$0xff]  ;;  %v66_v21 = vld [vmem:[%s1027_s1 + $0x118] sm:$0xff] }
  0x2e   :  { %197 = vmatprep.subr.bf16.mxu0 %v152_v60  ;;  %270 = vmatprep.mubr.bf16.mxu1 %v639_v7  ;;  %v148_v7 = vpack.c.bf16 %v74_v9, %v72_v8  ;;  %v145_v22 = vpack.c.bf16 %v69_v19, %v67_v18  ;;  %v144_v23 = vpack.c.bf16 %v66_v21, %v64_v20  ;;  %v63_v24 = vld [vmem:[%s1027_s1 + $0x100] sm:$0xff]  ;;  %v65_v25 = vld [vmem:[%s1027_s1 + $0x110] sm:$0xff]  ;;  %v16_v28 = vld [vmem:[%s1026_s0 + $0x18] sm:$0xff]  ;;  %v392_v8 = vlaneseq  ;;  %p625_p4 = pnand %p624_p3, %p618_p0 }
  0x2f   :  { %v143_v26 = vpack.c.bf16 %v65_v25, %v63_v24  ;;  %v13_v27 = vld [vmem:[%s1026_s0] sm:$0xff]  ;;  %v20_v29 = vld [vmem:[%s1026_s0 + $0x38] sm:$0xff]  ;;  %v23_v30 = vld [vmem:[%s1026_s0 + $0x50] sm:$0xff] }
  0x30   :  { %v25_v31 = vpack.c.bf16 %v16_v28, %v13_v27  ;;  %v29_v32 = vpack.c.bf16 %v23_v30, %v20_v29  ;;  %v19_v33 = vld [vmem:[%s1026_s0 + $0x30] sm:$0xff]  ;;  %v22_v34 = vld [vmem:[%s1026_s0 + $0x48] sm:$0xff]  ;;  %s642_s0 = smov 64   ;;  %v393_v9 = vshrl.u32 %v392_v8, 7 }
  0x31   :  { %198 = vmatpush2.bf16.msra.mxu0 %v151_v1  ;;  %v28_v35 = vpack.c.bf16 %v22_v34, %v19_v33 }
  0x32   :  { %199 = vmatprep.subr.bf16.mxu0 %v150_v3 }
  0x35   :  { %200 = vmatpush2.bf16.msra.mxu0 %v149_v10  ;;  %271 = vmatmul.mubr.bf16.gmra.mxu1 %v30_v11  ;;  %v396_v10 = vand.u32 127, %v392_v8 }
  0x36   :  { %201 = vmatprep.subr.bf16.mxu0 %v148_v7  ;;  %572 = vmatprep.mubr.msk.bf16.mxu1 %vm641_vm0, %v640_v39  ;;  %v394_v7 = vadd.s32 8, %v393_v9 }
  0x37   :  { %vm397_vm2 = vcmp.le.s32.totalorder %v396_v10, %v393_v9 }
  0x38   :  { %vm398_vm4 = vcmp.le.s32.totalorder %v396_v10, %v394_v7 }
  0x39   :  { %202 = vmatpush2.bf16.msra.mxu0 %v147_v16 }
  0x3a   :  { %203 = vmatprep.subr.bf16.mxu0 %v146_v17 }
  0x3d   :  { %204 = vmatpush2.bf16.msra.mxu0 %v145_v22 }
  0x3e   :  { %205 = vmatprep.subr.bf16.mxu0 %v144_v23 }
  0x41   :  { %206 = vmatpush2.bf16.msra.mxu0 %v143_v26 }
  0x44   :  { %208 = vmatmul.mubr.bf16.vlgmr.msra.gmra.mxu0 %v25_v31 }
  0x45   :  { %217 = vmatprep.mubr.bf16.mxu0 %v29_v32 }
  0x4c   :  { %218 = vmatmul.mubr.bf16.gmra.mxu0 %v28_v35 }
  0xed   :  { %v262_v36 = vpop.f32.mrf.mxu1 }
  0xef   :  { %v264_v37 = vpop.f32.mrf.mxu1 }
  0xf1   :  { %v266_v38 = vpop.f32.mrf.mxu1 }
  0xf3   :  { %v268_v41 = vpop.f32.mrf.mxu1 }
  0xf5   :  { %v272_v46 = vpop.f32.mrf.mxu1 }
  0xf7   :  { %v274_v54 = vpop.f32.mrf.mxu1 }
  0xf9   :  { %v276_v61 = vpop.f32.mrf.mxu1 }
  0xfb   :  { %v1003_v11 = vpop.f32.mrf.mxu1 }
 0x104   :  { %v209_v40 = vpop.f32.mrf.mxu0 }
 0x105   :  { %v263_v43 = vadd.f32 %v262_v36, %v209_v40 }
 0x106   :  { %v211_v42 = vpop.f32.mrf.mxu0 }
 0x107   :  { %v265_v44 = vadd.f32 %v264_v37, %v211_v42  ;;  %v281_v49 = vmul.f32 0.05103104, %v263_v43 }
 0x108   :  { %v213_v45 = vpop.f32.mrf.mxu0 }
 0x109   :  { %v267_v47 = vadd.f32 %v266_v38, %v213_v45 }
 0x10a   :  { %v215_v48 = vpop.f32.mrf.mxu0 }
 0x10b   :  { %v282_v50 = vmul.f32 0.05103104, %v267_v47  ;;  %v269_v51 = vadd.f32 %v268_v41, %v215_v48  ;;  %v287_v52 = vpack.c.bf16 %v267_v47, %v263_v43 }
 0x10c   :  { %v219_v53 = vpop.f32.mrf.mxu0 }
 0x10d   :  { %v285_v55 = vpack.c.bf16 %v282_v50, %v281_v49  ;;  %v289_v56 = vpack.c.bf16 %v269_v51, %v265_v44  ;;  %292 = vrot.lane.b32.xlu0 %v287_v52, %s642_s0  ;;  %v273_v58 = vadd.f32 %v272_v46, %v219_v53 }
 0x10e   :  { %v221_v57 = vpop.f32.mrf.mxu0 }
 0x10f   :  { %v990_v59 = vadd.f32 %v274_v54, %v221_v57  ;;  %v283_v63 = vmul.f32 0.05103104, %v273_v58 }
 0x110   :  { %v223_v60 = vpop.f32.mrf.mxu0 }
 0x111   :  { %v277_v62 = vadd.f32 %v276_v61, %v223_v60 }
 0x112   :  { %v225_v53 = vpop.f32.mrf.mxu0 }
 0x113   :  { %v284_v0 = vmul.f32 0.05103104, %v277_v62  ;;  %v288_v1 = vpack.c.bf16 %v277_v62, %v273_v58 }
 0x115   :  { %v286_v2 = vpack.c.bf16 %v284_v0, %v283_v63  ;;  %343 = vrot.lane.b32.xlu0 %v288_v1, %s642_s0 }
 0x17f   :  { %v293_v3 = vpop.permute.xlu0 %292 }
 0x180   :  { %v299_v4 = vsel %vm294_vm1, %v293_v3, 0 }
 0x181   :  { %571 = vmatpush3.bf16.xpose.msra.mxu1 %v299_v4 }
 0x182   :  { %576 = vmatprep.subr.bf16.mxu1 %v640_v39 }
 0x187   :  { %v344_v5 = vpop.permute.xlu0 %343 }
 0x188   :  { %v349_v6 = vsel %vm294_vm1, %v344_v5, 0  ;;  %573 = vmatmul.mubr.msk.bf16.vlgmr.msra.gmra.mxu1 %vm294_vm1, %v285_v55 }
 0x189   :  { %577 = vmatpush3.bf16.xpose.msra.mxu1 %v349_v6  ;;  %578 = vmatprep.mubr.msk.bf16.mxu1 %vm641_vm0, %v640_v39 }
 0x18a   :  { %582 = vmatprep.subr.bf16.mxu1 %v640_v39 }
 0x190   :  { %579 = vmatmul.mubr.msk.bf16.vlgmr.msra.gmra.mxu1 %vm294_vm1, %v286_v2 }
 0x191   :  { %583 = vmatpush3.bf16.msra.mxu1 %v289_v56  ;;  %584 = vmatprep.mubr.msk.bf16.mxu1 %vm641_vm0, %v640_v39  ;;  %v279_v56 = vadd.f32 %v1003_v11, %v225_v53 }
 0x192   :  { %588 = vmatprep.subr.bf16.mxu1 %v640_v39 }
 0x193   :  { %v290_v61 = vpack.c.bf16 %v279_v56, %v990_v59 }
 0x248   :  { %v335_v12 = vpop.f32.mrf.mxu1 }
 0x249   :  { %v399_v13 = vsel %vm397_vm2, %v335_v12, -inf }
 0x24a   :  { %v574_v14 = vpop.f32.mrf.mxu1  ;;  %v404_v15 = vsel %vm403_vm3, %v399_v13, -inf }
 0x24b   :  { %405 = vmax.xlane.f32.xlu1 %v404_v15 }
 0x24c   :  { %v338_v16 = vpop.f32.mrf.mxu1 }
 0x24d   :  { %v400_v17 = vsel %vm398_vm4, %v338_v16, -inf }
 0x24e   :  { %v575_v18 = vpop.f32.mrf.mxu1  ;;  %v407_v19 = vsel %vm403_vm3, %v400_v17, -inf }
 0x24f   :  { %408 = vmax.xlane.f32.xlu1 %v407_v19 }
 0x250   :  { %v385_v20 = vpop.f32.mrf.mxu1 }
 0x251   :  { %v401_v21 = vsel %vm397_vm2, %v385_v20, -inf }
 0x252   :  { %v580_v22 = vpop.f32.mrf.mxu1  ;;  %v410_v23 = vsel %vm403_vm3, %v401_v21, -inf }
 0x253   :  { %411 = vmax.xlane.f32.xlu0 %v410_v23 }
 0x254   :  { %v388_v24 = vpop.f32.mrf.mxu1 }
 0x255   :  { %v402_v25 = vsel %vm398_vm4, %v388_v24, -inf }
 0x256   :  { %v581_v26 = vpop.f32.mrf.mxu1  ;;  %v413_v27 = vsel %vm403_vm3, %v402_v25, -inf }
 0x257   :  { %414 = vmax.xlane.f32.xlu1 %v413_v27 }
 0x2d4   :  { %v406_v28 = vpop.xlane.xlu1 %405 }
 0x2d5   :  { %v416_v29 = vsub.f32 %v399_v13, %v406_v28 }
 0x2d7   :  { %v420_v30 = vmul.f32 1.442695, %v416_v29 }
 0x2d8   :  { %v409_v31 = vpop.xlane.xlu1 %408 }
 0x2d9   :  { %601 = vpow2.f32 %v420_v30  ;;  %v417_v32 = vsub.f32 %v400_v17, %v409_v31 }
 0x2db   :  { %v422_v33 = vmul.f32 1.442695, %v417_v32 }
 0x2dc   :  { %v412_v34 = vpop.xlane.xlu0 %411 }
 0x2dd   :  { %603 = vpow2.f32 %v422_v33  ;;  %v418_v35 = vsub.f32 %v401_v21, %v412_v34 }
 0x2df   :  { %v424_v36 = vmul.f32 1.442695, %v418_v35 }
 0x2e0   :  { %v415_v37 = vpop.xlane.xlu1 %414 }
 0x2e1   :  { %605 = vpow2.f32 %v424_v36  ;;  %v419_v38 = vsub.f32 %v402_v25, %v415_v37 }
 0x2e3   :  { %v426_v40 = vmul.f32 1.442695, %v419_v38 }
 0x2e5   :  { %607 = vpow2.f32 %v426_v40 }
 0x2e6   :  { %v602_v41 = vpop.eup %601 }
 0x2e7   :  { %v428_v42 = vsel %vm403_vm3, %v602_v41, 0.0 }
 0x2e8   :  { %429 = vadd.xlane.f32.xlu1 %v428_v42 }
 0x2ea   :  { %v604_v43 = vpop.eup %603 }
 0x2eb   :  { %v431_v44 = vsel %vm403_vm3, %v604_v43, 0.0 }
 0x2ec   :  { %432 = vadd.xlane.f32.xlu1 %v431_v44 }
 0x2ee   :  { %v606_v45 = vpop.eup %605 }
 0x2ef   :  { %v434_v46 = vsel %vm403_vm3, %v606_v45, 0.0 }
 0x2f0   :  { %435 = vadd.xlane.f32.xlu1 %v434_v46 }
 0x2f2   :  { %v608_v47 = vpop.eup %607 }
 0x2f3   :  { %v437_v48 = vsel %vm403_vm3, %v608_v47, 0.0 }
 0x2f4   :  { %438 = vadd.xlane.f32.xlu1 %v437_v48 }
 0x371   :  { %v430_v49 = vpop.xlane.xlu1 %429 }
 0x372   :  { %609 = vrcp.f32 %v430_v49 }
 0x375   :  { %v433_v50 = vpop.xlane.xlu1 %432 }
 0x376   :  { %611 = vrcp.f32 %v433_v50 }
 0x379   :  { %v436_v51 = vpop.xlane.xlu1 %435 }
 0x37a   :  { %613 = vrcp.f32 %v436_v51 }
 0x37d   :  { %v439_v52 = vpop.xlane.xlu1 %438 }
 0x37e   :  { %615 = vrcp.f32 %v439_v52 }
 0x37f   :  { %v610_v54 = vpop.eup %609 }
 0x380   :  { %v444_v57 = vmul.f32 %v610_v54, %v602_v41 }
 0x383   :  { %v612_v55 = vpop.eup %611 }
 0x384   :  { %v445_v58 = vmul.f32 %v612_v55, %v604_v43 }
 0x386   :  { %v448_v60 = vpack.c.bf16 %v445_v58, %v444_v57 }
 0x387   :  { %v614_v62 = vpop.eup %613 }
 0x388   :  { %585 = vmatmul.mubr.msk.bf16.vlgmr.msra.gmra.mxu1 %vm403_vm3, %v448_v60  ;;  %v446_v1 = vmul.f32 %v614_v62, %v606_v45 }
 0x389   :  { %589 = vmatpush3.bf16.msra.mxu1 %v290_v61  ;;  %590 = vmatprep.mubr.msk.bf16.mxu1 %vm641_vm0, %v640_v39 }
 0x38b   :  { %v616_v63 = vpop.eup %615 }
 0x38c   :  { %v447_v0 = vmul.f32 %v616_v63, %v608_v47 }
 0x38e   :  { %v449_v2 = vpack.c.bf16 %v447_v0, %v446_v1 }
 0x390   :  { %591 = vmatmul.mubr.msk.bf16.vlgmr.msra.gmra.mxu1 %vm403_vm3, %v449_v2 }
 0x448   :  { %v487_v3 = vpop.f32.mrf.mxu1 }
 0x449   :  { %538 = vst.msk [vmem:[#allocation2] sm:$0xff] %vm294_vm1, %v487_v3 }
 0x44a   :  { %v586_v4 = vpop.f32.mrf.mxu1 }
 0x44c   :  { %v490_v5 = vpop.f32.mrf.mxu1 }
 0x44d   :  { %539 = vst.msk [vmem:[#allocation2 + $0x8] sm:$0xff] %vm294_vm1, %v490_v5 }
 0x44e   :  { %v587_v59 = vpop.f32.mrf.mxu1 }
 0x450   :  { %v531_v6 = vpop.f32.mrf.mxu1 }
 0x451   :  { %540 = vst.msk [vmem:[#allocation2 + $0x10] sm:$0xff] %vm294_vm1, %v531_v6 }
 0x452   :  { %v592_v39 = vpop.f32.mrf.mxu1 }
 0x454   :  { %v534_v8 = vpop.f32.mrf.mxu1 }
 0x455   :  { %541 = vst.msk [vmem:[#allocation2 + $0x18] sm:$0xff] %vm294_vm1, %v534_v8 }
 0x456   :  { %v593_v9 = vpop.f32.mrf.mxu1 }
 0x457   :  { %628 = shalt.err (!%p625_p4)
}
 0x458   :  { %s644_s3 = smov 128   ;;  %s645_s4 = smov 8  }
 0x459   :  { %553 = dma.vmem_to_hbm [thread:$0]  %s548_s29, 512, %s1028_s2, [#allocation3], %s644_s3, %s644_s3, %s645_s4  }
 0x45a   :  { %637 = dma.done.wait [#allocation3], 512  }
 0x45b   :  { %638 = vsyncadd [#allocation3], 4294966784 }
 0x45c   :  { %557 = vsyncpa [#allocation3], 1 }

</bundles_post_ra>
